<compile_context>
chip_gen: v6e
topology: v6e:2x2x1
jax: 0.10.0
libtpu: 0.0.40
codegen_flags: <defaults>
</compile_context>

<pallas_src>
import jax
import jax.numpy as jnp
from jax.experimental import pallas as pl
from jax.experimental.pallas import tpu as pltpu

_LANE = 128
_SUBLANE = 8


def _ceil_to(a, m):
    return -(-a // m) * m


def _kam_kernel(x_ref, wpsi_ref, bpsi_ref, wphi_ref, bphi_sum_ref, o_ref):
    # x_ref        : VMEM (C, R, 128)   dense per-channel pixel planes (batch squeezed)
    # wpsi_ref     : SMEM (T, C)        psi 1x1-conv weights
    # bpsi_ref     : SMEM (T,)          psi biases
    # wphi_ref     : SMEM (T, C)        phi 1x1-conv weights
    # bphi_sum_ref : SMEM (C,)          sum over terms of the phi biases
    # o_ref        : VMEM (C, R, 128)
    C = x_ref.shape[0]
    T = bpsi_ref.shape[0]

    # Load each channel's dense (R, 128) plane once.
    x = [x_ref[c].astype(jnp.float32) for c in range(C)]

    acc = None
    for i in range(T):
        # psi_i(x) = relu(sum_c Wpsi[i,c] * x[c] + bpsi[i])  -> dense (R, 128)
        term = x[0] * wpsi_ref[i, 0]
        for c in range(1, C):
            term = term + x[c] * wpsi_ref[i, c]
        term = jnp.maximum(term + bpsi_ref[i], 0.0)
        # phi_i: accumulate into per-output-channel planes right away
        # (interleaved -> only one `term` intermediate is ever live).
        if acc is None:
            acc = [term * wphi_ref[i, c] for c in range(C)]
        else:
            acc = [acc[c] + term * wphi_ref[i, c] for c in range(C)]

    for c in range(C):
        # Dense full-plane store (unmasked vst).
        o_ref[c] = (acc[c] + bphi_sum_ref[c]).astype(o_ref.dtype)


def kolmogorov_arnold_forward(x_nchw, w_psi, b_psi, w_phi, b_phi, *,
                              rows_tile_max=1024):
    """x_nchw: (B, C, H, W) float32.
    w_psi: (T, C)  b_psi: (T,)   -- psi[i] = Conv2d(C, 1, 1) weight/bias
    w_phi: (T, C)  b_phi: (T, C) -- phi[i] = Conv2d(1, C, 1) weight/bias
    Returns (B, C, H, W)."""
    B, C, H, W = x_nchw.shape
    T = w_psi.shape[0]
    P = H * W

    # Pixels -> dense (rows, 128) planes per channel.
    rows = _ceil_to(P, _LANE) // _LANE

    if rows <= _SUBLANE:
        # Tiny input: one full-extent pixel block (block == full dims, no
        # (8,128) divisibility requirement).
        rows_tile = rows
    else:
        rows_tile = min(rows_tile_max, _ceil_to(rows, _SUBLANE))
        if B == 1:
            # v7x megacore: guarantee >= 2 "parallel" grid steps.
            half = _ceil_to(-(-rows // 2), _SUBLANE)
            rows_tile = max(_SUBLANE, min(rows_tile, half))

    n_tiles = -(-rows // rows_tile)
    rows_padded = n_tiles * rows_tile
    p_pad = rows_padded * _LANE

    # NCHW -> (B, C, P) is a pure reshape; pad the pixel axis once so every
    # block is full (no masked edge tiles), then expose dense 128-lane planes.
    x = x_nchw.reshape(B, C, P)
    if p_pad != P:
        x = jnp.pad(x, ((0, 0), (0, 0), (0, p_pad - P)))
    x = x.reshape(B, C, rows_padded, _LANE)

    # Fold the per-term phi biases: they do not depend on the data.
    bphi_sum = jnp.sum(b_phi, axis=0)  # (C,)

    grid = (B, n_tiles)

    # VMEM budget: in + out blocks, double buffered, plus slack.
    block_bytes = C * rows_tile * _LANE * x.dtype.itemsize
    vmem_bytes = int(min(max(4 * block_bytes + (4 << 20), 8 << 20), 32 << 20))

    n_pix = B * P
    flops = n_pix * T * (2 * C + 2) + n_pix * T * 2 * C + n_pix * C
    bytes_accessed = 2 * n_pix * C * x.dtype.itemsize + (2 * T * C + T + C) * 4

    out = pl.pallas_call(
        _kam_kernel,
        out_shape=jax.ShapeDtypeStruct((B, C, rows_padded, _LANE), x.dtype),
        grid_spec=pltpu.PrefetchScalarGridSpec(
            num_scalar_prefetch=0,
            grid=grid,
            in_specs=[
                # x tile: squeeze the batch dim -> kernel sees (C, rows_tile, 128)
                pl.BlockSpec((None, C, rows_tile, _LANE),
                             lambda b, p: (b, 0, p, 0)),
                # tiny weight/bias tables live in SMEM, read as scalars
                pl.BlockSpec(memory_space=pltpu.MemorySpace.SMEM),  # w_psi (T, C)
                pl.BlockSpec(memory_space=pltpu.MemorySpace.SMEM),  # b_psi (T,)
                pl.BlockSpec(memory_space=pltpu.MemorySpace.SMEM),  # w_phi (T, C)
                pl.BlockSpec(memory_space=pltpu.MemorySpace.SMEM),  # bphi_sum (C,)
            ],
            out_specs=pl.BlockSpec((None, C, rows_tile, _LANE),
                                   lambda b, p: (b, 0, p, 0)),
        ),
        compiler_params=pltpu.CompilerParams(
            dimension_semantics=("parallel", "parallel"),
            vmem_limit_bytes=vmem_bytes,
        ),
        cost_estimate=pl.CostEstimate(
            flops=flops, transcendentals=0, bytes_accessed=bytes_accessed),
    )(x, w_psi, b_psi, w_phi, bphi_sum)

    # Drop pixel padding and restore NCHW.
    out = out.reshape(B, C, rows_padded * _LANE)[:, :, :P]
    return out.reshape(B, C, H, W)


def _reference(x_nchw, w_psi, b_psi, w_phi, b_phi):
    """Plain-JAX reference mirroring the PyTorch forward."""
    T = w_psi.shape[0]
    out = jnp.zeros_like(x_nchw)
    for i in range(T):
        # psi[i]: Conv2d(C, 1, 1x1)
        term = jnp.einsum('bchw,c->bhw', x_nchw, w_psi[i]) + b_psi[i]  # (B,H,W)
        term = jnp.maximum(term, 0.0)
        # phi[i]: Conv2d(1, C, 1x1)
        term = term[:, None, :, :] * w_phi[i][None, :, None, None] + \
               b_phi[i][None, :, None, None]
        out = out + term
    return out


def _run_case(key, B, C, H, W, num_terms=3):
    k_x, k_wpsi, k_bpsi, k_wphi, k_bphi = jax.random.split(key, 5)
    x = jax.random.normal(k_x, (B, C, H, W), dtype=jnp.float32)

    # Deterministic parameter init (uniform, kaiming-ish bounds like nn.Conv2d).
    bound_psi = 1.0 / (C ** 0.5)   # fan_in = C for psi
    bound_phi = 1.0                # fan_in = 1 for phi
    w_psi = jax.random.uniform(k_wpsi, (num_terms, C), jnp.float32,
                               -bound_psi, bound_psi)
    b_psi = jax.random.uniform(k_bpsi, (num_terms,), jnp.float32,
                               -bound_psi, bound_psi)
    w_phi = jax.random.uniform(k_wphi, (num_terms, C), jnp.float32,
                               -bound_phi, bound_phi)
    b_phi = jax.random.uniform(k_bphi, (num_terms, C), jnp.float32,
                               -bound_phi, bound_phi)

    out = kolmogorov_arnold_forward(x, w_psi, b_psi, w_phi, b_phi)
    out = jax.block_until_ready(out)

    ref = _reference(x, w_psi, b_psi, w_phi, b_phi)
    assert out.shape == (B, C, H, W)
    assert jnp.allclose(out, ref, atol=1e-5, rtol=1e-5), \
        f"mismatch vs reference for shape {(B, C, H, W)}"


if __name__ == "__main__":
    key = jax.random.PRNGKey(0)
    k0, k1, k2 = jax.random.split(key, 3)

    # Main case from the module spec.
    _run_case(k0, B=2, C=4, H=16, W=16)
    # Non-128-divisible H*W: exercises the one-time lane pad + slice-off.
    _run_case(k1, B=3, C=4, H=5, W=7)
    # B == 1 with enough pixels to split the pixel-tile axis (>=2 parallel steps).
    _run_case(k2, B=1, C=4, H=40, W=40)

    print("KERNEL_OK")
</pallas_src>

<mosaic_0001>
module attributes {stable_mosaic.version = 11 : i64} {
  func.func @_kam_kernel(%arg0: i32, %arg1: i32, %arg2: memref<1x4x2x128xf32, #tpu.memory_space<vmem>>, %arg3: memref<3x4xf32, #tpu.memory_space<smem>>, %arg4: memref<3xf32, #tpu.memory_space<smem>>, %arg5: memref<3x4xf32, #tpu.memory_space<smem>>, %arg6: memref<4xf32, #tpu.memory_space<smem>>, %arg7: memref<1x4x2x128xf32, #tpu.memory_space<vmem>>) attributes {dimension_semantics = [#tpu.dimension_semantics<parallel>, #tpu.dimension_semantics<parallel>], iteration_bounds = array<i64: 2, 1>, scalar_prefetch = 0 : i64, scratch_operands = 0 : i64, tpu.core_type = #tpu.core_type<tc>, window_params = [{transform_indices = @transform_0, window_bounds = array<i64: 1, 4, 2, 128>}, {transform_indices = @transform_1, window_bounds = array<i64: 3, 4>}, {transform_indices = @transform_2, window_bounds = array<i64: 3>}, {transform_indices = @transform_3, window_bounds = array<i64: 3, 4>}, {transform_indices = @transform_4, window_bounds = array<i64: 4>}, {transform_indices = @transform_5, window_bounds = array<i64: 1, 4, 2, 128>}]} {
    %c0 = arith.constant 0 : index
    %c0_0 = arith.constant 0 : index
    %c0_1 = arith.constant 0 : index
    %c0_2 = arith.constant 0 : index
    %0 = vector.load %arg2[%c0, %c0_0, %c0_1, %c0_2] : memref<1x4x2x128xf32, #tpu.memory_space<vmem>>, vector<1x1x2x128xf32>
    %1 = vector.shape_cast %0 : vector<1x1x2x128xf32> to vector<2x128xf32>
    %c0_3 = arith.constant 0 : index
    %c1 = arith.constant 1 : index
    %c0_4 = arith.constant 0 : index
    %c0_5 = arith.constant 0 : index
    %2 = vector.load %arg2[%c0_3, %c1, %c0_4, %c0_5] : memref<1x4x2x128xf32, #tpu.memory_space<vmem>>, vector<1x1x2x128xf32>
    %3 = vector.shape_cast %2 : vector<1x1x2x128xf32> to vector<2x128xf32>
    %c0_6 = arith.constant 0 : index
    %c2 = arith.constant 2 : index
    %c0_7 = arith.constant 0 : index
    %c0_8 = arith.constant 0 : index
    %4 = vector.load %arg2[%c0_6, %c2, %c0_7, %c0_8] : memref<1x4x2x128xf32, #tpu.memory_space<vmem>>, vector<1x1x2x128xf32>
    %5 = vector.shape_cast %4 : vector<1x1x2x128xf32> to vector<2x128xf32>
    %c0_9 = arith.constant 0 : index
    %c3 = arith.constant 3 : index
    %c0_10 = arith.constant 0 : index
    %c0_11 = arith.constant 0 : index
    %6 = vector.load %arg2[%c0_9, %c3, %c0_10, %c0_11] : memref<1x4x2x128xf32, #tpu.memory_space<vmem>>, vector<1x1x2x128xf32>
    %7 = vector.shape_cast %6 : vector<1x1x2x128xf32> to vector<2x128xf32>
    %c0_12 = arith.constant 0 : index
    %c0_13 = arith.constant 0 : index
    %8 = memref.load %arg3[%c0_12, %c0_13] : memref<3x4xf32, #tpu.memory_space<smem>>
    %9 = vector.broadcast %8 : f32 to vector<2x128xf32>
    %10 = arith.mulf %1, %9 : vector<2x128xf32>
    %c0_14 = arith.constant 0 : index
    %c1_15 = arith.constant 1 : index
    %11 = memref.load %arg3[%c0_14, %c1_15] : memref<3x4xf32, #tpu.memory_space<smem>>
    %12 = vector.broadcast %11 : f32 to vector<2x128xf32>
    %13 = arith.mulf %3, %12 : vector<2x128xf32>
    %14 = arith.addf %10, %13 : vector<2x128xf32>
    %c0_16 = arith.constant 0 : index
    %c2_17 = arith.constant 2 : index
    %15 = memref.load %arg3[%c0_16, %c2_17] : memref<3x4xf32, #tpu.memory_space<smem>>
    %16 = vector.broadcast %15 : f32 to vector<2x128xf32>
    %17 = arith.mulf %5, %16 : vector<2x128xf32>
    %18 = arith.addf %14, %17 : vector<2x128xf32>
    %c0_18 = arith.constant 0 : index
    %c3_19 = arith.constant 3 : index
    %19 = memref.load %arg3[%c0_18, %c3_19] : memref<3x4xf32, #tpu.memory_space<smem>>
    %20 = vector.broadcast %19 : f32 to vector<2x128xf32>
    %21 = arith.mulf %7, %20 : vector<2x128xf32>
    %22 = arith.addf %18, %21 : vector<2x128xf32>
    %c0_20 = arith.constant 0 : index
    %23 = memref.load %arg4[%c0_20] : memref<3xf32, #tpu.memory_space<smem>>
    %24 = vector.broadcast %23 : f32 to vector<2x128xf32>
    %25 = arith.addf %22, %24 : vector<2x128xf32>
    %cst = arith.constant 0.000000e+00 : f32
    %26 = vector.broadcast %cst : f32 to vector<2x128xf32>
    %27 = arith.maximumf %25, %26 : vector<2x128xf32>
    %c0_21 = arith.constant 0 : index
    %c0_22 = arith.constant 0 : index
    %28 = memref.load %arg5[%c0_21, %c0_22] : memref<3x4xf32, #tpu.memory_space<smem>>
    %29 = vector.broadcast %28 : f32 to vector<2x128xf32>
    %30 = arith.mulf %27, %29 : vector<2x128xf32>
    %c0_23 = arith.constant 0 : index
    %c1_24 = arith.constant 1 : index
    %31 = memref.load %arg5[%c0_23, %c1_24] : memref<3x4xf32, #tpu.memory_space<smem>>
    %32 = vector.broadcast %31 : f32 to vector<2x128xf32>
    %33 = arith.mulf %27, %32 : vector<2x128xf32>
    %c0_25 = arith.constant 0 : index
    %c2_26 = arith.constant 2 : index
    %34 = memref.load %arg5[%c0_25, %c2_26] : memref<3x4xf32, #tpu.memory_space<smem>>
    %35 = vector.broadcast %34 : f32 to vector<2x128xf32>
    %36 = arith.mulf %27, %35 : vector<2x128xf32>
    %c0_27 = arith.constant 0 : index
    %c3_28 = arith.constant 3 : index
    %37 = memref.load %arg5[%c0_27, %c3_28] : memref<3x4xf32, #tpu.memory_space<smem>>
    %38 = vector.broadcast %37 : f32 to vector<2x128xf32>
    %39 = arith.mulf %27, %38 : vector<2x128xf32>
    %c1_29 = arith.constant 1 : index
    %c0_30 = arith.constant 0 : index
    %40 = memref.load %arg3[%c1_29, %c0_30] : memref<3x4xf32, #tpu.memory_space<smem>>
    %41 = vector.broadcast %40 : f32 to vector<2x128xf32>
    %42 = arith.mulf %1, %41 : vector<2x128xf32>
    %c1_31 = arith.constant 1 : index
    %c1_32 = arith.constant 1 : index
    %43 = memref.load %arg3[%c1_31, %c1_32] : memref<3x4xf32, #tpu.memory_space<smem>>
    %44 = vector.broadcast %43 : f32 to vector<2x128xf32>
    %45 = arith.mulf %3, %44 : vector<2x128xf32>
    %46 = arith.addf %42, %45 : vector<2x128xf32>
    %c1_33 = arith.constant 1 : index
    %c2_34 = arith.constant 2 : index
    %47 = memref.load %arg3[%c1_33, %c2_34] : memref<3x4xf32, #tpu.memory_space<smem>>
    %48 = vector.broadcast %47 : f32 to vector<2x128xf32>
    %49 = arith.mulf %5, %48 : vector<2x128xf32>
    %50 = arith.addf %46, %49 : vector<2x128xf32>
    %c1_35 = arith.constant 1 : index
    %c3_36 = arith.constant 3 : index
    %51 = memref.load %arg3[%c1_35, %c3_36] : memref<3x4xf32, #tpu.memory_space<smem>>
    %52 = vector.broadcast %51 : f32 to vector<2x128xf32>
    %53 = arith.mulf %7, %52 : vector<2x128xf32>
    %54 = arith.addf %50, %53 : vector<2x128xf32>
    %c1_37 = arith.constant 1 : index
    %55 = memref.load %arg4[%c1_37] : memref<3xf32, #tpu.memory_space<smem>>
    %56 = vector.broadcast %55 : f32 to vector<2x128xf32>
    %57 = arith.addf %54, %56 : vector<2x128xf32>
    %cst_38 = arith.constant 0.000000e+00 : f32
    %58 = vector.broadcast %cst_38 : f32 to vector<2x128xf32>
    %59 = arith.maximumf %57, %58 : vector<2x128xf32>
    %c1_39 = arith.constant 1 : index
    %c0_40 = arith.constant 0 : index
    %60 = memref.load %arg5[%c1_39, %c0_40] : memref<3x4xf32, #tpu.memory_space<smem>>
    %61 = vector.broadcast %60 : f32 to vector<2x128xf32>
    %62 = arith.mulf %59, %61 : vector<2x128xf32>
    %63 = arith.addf %30, %62 : vector<2x128xf32>
    %c1_41 = arith.constant 1 : index
    %c1_42 = arith.constant 1 : index
    %64 = memref.load %arg5[%c1_41, %c1_42] : memref<3x4xf32, #tpu.memory_space<smem>>
    %65 = vector.broadcast %64 : f32 to vector<2x128xf32>
    %66 = arith.mulf %59, %65 : vector<2x128xf32>
    %67 = arith.addf %33, %66 : vector<2x128xf32>
    %c1_43 = arith.constant 1 : index
    %c2_44 = arith.constant 2 : index
    %68 = memref.load %arg5[%c1_43, %c2_44] : memref<3x4xf32, #tpu.memory_space<smem>>
    %69 = vector.broadcast %68 : f32 to vector<2x128xf32>
    %70 = arith.mulf %59, %69 : vector<2x128xf32>
    %71 = arith.addf %36, %70 : vector<2x128xf32>
    %c1_45 = arith.constant 1 : index
    %c3_46 = arith.constant 3 : index
    %72 = memref.load %arg5[%c1_45, %c3_46] : memref<3x4xf32, #tpu.memory_space<smem>>
    %73 = vector.broadcast %72 : f32 to vector<2x128xf32>
    %74 = arith.mulf %59, %73 : vector<2x128xf32>
    %75 = arith.addf %39, %74 : vector<2x128xf32>
    %c2_47 = arith.constant 2 : index
    %c0_48 = arith.constant 0 : index
    %76 = memref.load %arg3[%c2_47, %c0_48] : memref<3x4xf32, #tpu.memory_space<smem>>
    %77 = vector.broadcast %76 : f32 to vector<2x128xf32>
    %78 = arith.mulf %1, %77 : vector<2x128xf32>
    %c2_49 = arith.constant 2 : index
    %c1_50 = arith.constant 1 : index
    %79 = memref.load %arg3[%c2_49, %c1_50] : memref<3x4xf32, #tpu.memory_space<smem>>
    %80 = vector.broadcast %79 : f32 to vector<2x128xf32>
    %81 = arith.mulf %3, %80 : vector<2x128xf32>
    %82 = arith.addf %78, %81 : vector<2x128xf32>
    %c2_51 = arith.constant 2 : index
    %c2_52 = arith.constant 2 : index
    %83 = memref.load %arg3[%c2_51, %c2_52] : memref<3x4xf32, #tpu.memory_space<smem>>
    %84 = vector.broadcast %83 : f32 to vector<2x128xf32>
    %85 = arith.mulf %5, %84 : vector<2x128xf32>
    %86 = arith.addf %82, %85 : vector<2x128xf32>
    %c2_53 = arith.constant 2 : index
    %c3_54 = arith.constant 3 : index
    %87 = memref.load %arg3[%c2_53, %c3_54] : memref<3x4xf32, #tpu.memory_space<smem>>
    %88 = vector.broadcast %87 : f32 to vector<2x128xf32>
    %89 = arith.mulf %7, %88 : vector<2x128xf32>
    %90 = arith.addf %86, %89 : vector<2x128xf32>
    %c2_55 = arith.constant 2 : index
    %91 = memref.load %arg4[%c2_55] : memref<3xf32, #tpu.memory_space<smem>>
    %92 = vector.broadcast %91 : f32 to vector<2x128xf32>
    %93 = arith.addf %90, %92 : vector<2x128xf32>
    %cst_56 = arith.constant 0.000000e+00 : f32
    %94 = vector.broadcast %cst_56 : f32 to vector<2x128xf32>
    %95 = arith.maximumf %93, %94 : vector<2x128xf32>
    %c2_57 = arith.constant 2 : index
    %c0_58 = arith.constant 0 : index
    %96 = memref.load %arg5[%c2_57, %c0_58] : memref<3x4xf32, #tpu.memory_space<smem>>
    %97 = vector.broadcast %96 : f32 to vector<2x128xf32>
    %98 = arith.mulf %95, %97 : vector<2x128xf32>
    %99 = arith.addf %63, %98 : vector<2x128xf32>
    %c2_59 = arith.constant 2 : index
    %c1_60 = arith.constant 1 : index
    %100 = memref.load %arg5[%c2_59, %c1_60] : memref<3x4xf32, #tpu.memory_space<smem>>
    %101 = vector.broadcast %100 : f32 to vector<2x128xf32>
    %102 = arith.mulf %95, %101 : vector<2x128xf32>
    %103 = arith.addf %67, %102 : vector<2x128xf32>
    %c2_61 = arith.constant 2 : index
    %c2_62 = arith.constant 2 : index
    %104 = memref.load %arg5[%c2_61, %c2_62] : memref<3x4xf32, #tpu.memory_space<smem>>
    %105 = vector.broadcast %104 : f32 to vector<2x128xf32>
    %106 = arith.mulf %95, %105 : vector<2x128xf32>
    %107 = arith.addf %71, %106 : vector<2x128xf32>
    %c2_63 = arith.constant 2 : index
    %c3_64 = arith.constant 3 : index
    %108 = memref.load %arg5[%c2_63, %c3_64] : memref<3x4xf32, #tpu.memory_space<smem>>
    %109 = vector.broadcast %108 : f32 to vector<2x128xf32>
    %110 = arith.mulf %95, %109 : vector<2x128xf32>
    %111 = arith.addf %75, %110 : vector<2x128xf32>
    %c0_65 = arith.constant 0 : index
    %112 = memref.load %arg6[%c0_65] : memref<4xf32, #tpu.memory_space<smem>>
    %113 = vector.broadcast %112 : f32 to vector<2x128xf32>
    %114 = arith.addf %99, %113 : vector<2x128xf32>
    %c0_66 = arith.constant 0 : index
    %c0_67 = arith.constant 0 : index
    %c0_68 = arith.constant 0 : index
    %c0_69 = arith.constant 0 : index
    %115 = vector.load %arg7[%c0_66, %c0_67, %c0_68, %c0_69] : memref<1x4x2x128xf32, #tpu.memory_space<vmem>>, vector<1x1x2x128xf32>
    %116 = vector.shape_cast %115 : vector<1x1x2x128xf32> to vector<2x128xf32>
    %117 = vector.shape_cast %114 : vector<2x128xf32> to vector<1x1x2x128xf32>
    tpu.vector_store %arg7[%c0_66, %c0_67, %c0_68, %c0_69], %117 {strides = array<i32>} : memref<1x4x2x128xf32, #tpu.memory_space<vmem>>, vector<1x1x2x128xf32>,
    %c1_70 = arith.constant 1 : index
    %118 = memref.load %arg6[%c1_70] : memref<4xf32, #tpu.memory_space<smem>>
    %119 = vector.broadcast %118 : f32 to vector<2x128xf32>
    %120 = arith.addf %103, %119 : vector<2x128xf32>
    %c0_71 = arith.constant 0 : index
    %c1_72 = arith.constant 1 : index
    %c0_73 = arith.constant 0 : index
    %c0_74 = arith.constant 0 : index
    %121 = vector.load %arg7[%c0_71, %c1_72, %c0_73, %c0_74] : memref<1x4x2x128xf32, #tpu.memory_space<vmem>>, vector<1x1x2x128xf32>
    %122 = vector.shape_cast %121 : vector<1x1x2x128xf32> to vector<2x128xf32>
    %123 = vector.shape_cast %120 : vector<2x128xf32> to vector<1x1x2x128xf32>
    tpu.vector_store %arg7[%c0_71, %c1_72, %c0_73, %c0_74], %123 {strides = array<i32>} : memref<1x4x2x128xf32, #tpu.memory_space<vmem>>, vector<1x1x2x128xf32>,
    %c2_75 = arith.constant 2 : index
    %124 = memref.load %arg6[%c2_75] : memref<4xf32, #tpu.memory_space<smem>>
    %125 = vector.broadcast %124 : f32 to vector<2x128xf32>
    %126 = arith.addf %107, %125 : vector<2x128xf32>
    %c0_76 = arith.constant 0 : index
    %c2_77 = arith.constant 2 : index
    %c0_78 = arith.constant 0 : index
    %c0_79 = arith.constant 0 : index
    %127 = vector.load %arg7[%c0_76, %c2_77, %c0_78, %c0_79] : memref<1x4x2x128xf32, #tpu.memory_space<vmem>>, vector<1x1x2x128xf32>
    %128 = vector.shape_cast %127 : vector<1x1x2x128xf32> to vector<2x128xf32>
    %129 = vector.shape_cast %126 : vector<2x128xf32> to vector<1x1x2x128xf32>
    tpu.vector_store %arg7[%c0_76, %c2_77, %c0_78, %c0_79], %129 {strides = array<i32>} : memref<1x4x2x128xf32, #tpu.memory_space<vmem>>, vector<1x1x2x128xf32>,
    %c3_80 = arith.constant 3 : index
    %130 = memref.load %arg6[%c3_80] : memref<4xf32, #tpu.memory_space<smem>>
    %131 = vector.broadcast %130 : f32 to vector<2x128xf32>
    %132 = arith.addf %111, %131 : vector<2x128xf32>
    %c0_81 = arith.constant 0 : index
    %c3_82 = arith.constant 3 : index
    %c0_83 = arith.constant 0 : index
    %c0_84 = arith.constant 0 : index
    %133 = vector.load %arg7[%c0_81, %c3_82, %c0_83, %c0_84] : memref<1x4x2x128xf32, #tpu.memory_space<vmem>>, vector<1x1x2x128xf32>
    %134 = vector.shape_cast %133 : vector<1x1x2x128xf32> to vector<2x128xf32>
    %135 = vector.shape_cast %132 : vector<2x128xf32> to vector<1x1x2x128xf32>
    tpu.vector_store %arg7[%c0_81, %c3_82, %c0_83, %c0_84], %135 {strides = array<i32>} : memref<1x4x2x128xf32, #tpu.memory_space<vmem>>, vector<1x1x2x128xf32>,
    return
  }
  func.func @transform_0(%arg0: i32, %arg1: i32) -> (i32, i32, i32, i32) {
    %c0_i32 = arith.constant 0 : i32
    %c0_i32_0 = arith.constant 0 : i32
    %c0_i32_1 = arith.constant 0 : i32
    return %arg0, %c0_i32, %arg1, %c0_i32_0 : i32, i32, i32, i32
  }
  func.func @transform_1(%arg0: i32, %arg1: i32) -> (i32, i32) {
    %c0_i32 = arith.constant 0 : i32
    %c0_i32_0 = arith.constant 0 : i32
    %c0_i32_1 = arith.constant 0 : i32
    return %c0_i32, %c0_i32_0 : i32, i32
  }
  func.func @transform_2(%arg0: i32, %arg1: i32) -> i32 {
    %c0_i32 = arith.constant 0 : i32
    %c0_i32_0 = arith.constant 0 : i32
    return %c0_i32 : i32
  }
  func.func @transform_3(%arg0: i32, %arg1: i32) -> (i32, i32) {
    %c0_i32 = arith.constant 0 : i32
    %c0_i32_0 = arith.constant 0 : i32
    %c0_i32_1 = arith.constant 0 : i32
    return %c0_i32, %c0_i32_0 : i32, i32
  }
  func.func @transform_4(%arg0: i32, %arg1: i32) -> i32 {
    %c0_i32 = arith.constant 0 : i32
    %c0_i32_0 = arith.constant 0 : i32
    return %c0_i32 : i32
  }
  func.func @transform_5(%arg0: i32, %arg1: i32) -> (i32, i32, i32, i32) {
    %c0_i32 = arith.constant 0 : i32
    %c0_i32_0 = arith.constant 0 : i32
    %c0_i32_1 = arith.constant 0 : i32
    return %arg0, %c0_i32, %arg1, %c0_i32_0 : i32, i32, i32, i32
  }
}

</mosaic_0001>

<bundles_post_ra>
// kernel: tpu_custom_call.1
= control target key start
LH: loop header
LB: loop body
LE: loop exit
PB: predicated region body
PF: predicated region fallthrough
CT: control target
= control target key end

     0   :  { %s1209_s0 = inlined_call_operand.hbm [shape: f32[2,4,2,128], index: 0, kind: input, shape index: {}]   ;;  %s1210_s1 = inlined_call_operand.hbm [shape: f32[3,4], index: 1, kind: input, shape index: {}]   ;;  %s1211_s2 = inlined_call_operand.vmem [shape: f32[3], index: 2, kind: input, shape index: {}]   ;;  %s1212_s3 = inlined_call_operand.vmem [shape: f32[3,4], index: 3, kind: input, shape index: {}]   ;;  %s1213_s4 = inlined_call_operand.vmem [shape: f32[4], index: 4, kind: input, shape index: {}]   ;;  %s1214_s5 = inlined_call_operand.hbm [shape: f32[2,4,2,128], index: 5, kind: output, shape index: {}]  }
   0x1   :  { %1219 = sst [smem:[#allocation18_spill]] %s1210_s1 }
   0x2   :  { %10 = vsyncpa [#allocation3], 0 }
   0x3   :  { %12 = vsyncpa [#allocation3 + $0x1], 0 }
   0x4   :  { %13 = vsyncpa [#allocation5], 0 }
   0x5   :  { %14 = vsyncpa [#allocation6], 0 }
   0x6   :  { %15 = vsyncpa [#allocation10], 0 }
   0x7   :  { %16 = vsyncpa [#allocation4], 0 }
   0x8   :  { %18 = vsyncpa [#allocation4 + $0x1], 0  ;;  %s963_s18 = smov 0   ;;  %s965_s19 = smov 0  }
   0x9   :  { %s967_s20 = smov 0   ;;  %s969_s21 = smov 0  }
   0xa   :  { %s971_s22 = smov 0   ;;  %s973_s23 = smov 0  }
   0xb LB: > { %s580_s24 = sadd.s32 4294967295, %s921_s23   ;;  %s581_s25 = sadd.s32 4294967294, %s921_s23   ;;  %s921_s23 = sphi %s973_s23, %s24_s23   ;;  %s917_s22 = sphi %s971_s22, %s1239_s22   ;;  %s913_s21 = sphi %s969_s21, %s1238_s21   ;;  %s909_s20 = sphi %s967_s20, %s1237_s20   ;;  %s905_s19 = sphi %s965_s19, %s1236_s19   ;;  %s901_s18 = sphi %s963_s18, %s1235_s18  }
   0xc   : > { %p58_p0 = scmp.ne.s32.totalorder %s905_s19, %s901_s18  ;;  %p997_p1 = scmp.eq.s32.totalorder %s580_s24, 0 }
   0xd   : > { %p1001_p2 = scmp.eq.s32.totalorder %s580_s24, 1  ;;  %p174_p3 = scmp.eq.s32.totalorder %s581_s25, 1 }
   0xe   : > { %s1220_s26 = scalar_select %p997_p1, 1, 0 }
   0xf   : > { %s1221_s27 = scalar_select %p1001_p2, 1, 0 }
  0x10   : > { %p1007_p4 = por %p997_p1, %p58_p0  ;;  %p582_p5 = scmp.ge.s32.totalorder %s921_s23, 1 }
  0x11   : > { %p1012_p6 = por %p174_p3, %p58_p0  ;;  %p181_p7 = scmp.lt.s32.totalorder %s921_s23, 3 }
  0x12   : > { %s1222_s28 = scalar_select %p1007_p4, 1, 0 }
  0x13   : > { %s1223_s29 = scalar_select %p1012_p6, 1, 0 }
  0x14   : > { %s214_s7 = sshll.u32 %s1212_s3, 4  ;;  %p1020_p8 = pnand %p582_p5, %p181_p7  ;;  %s215_s7 = int_to_ptr.vmem [resolvable:$true] %s214_s7 }
  0x15   : > { %s203_s12 = sshll.u32 %s1211_s2, 4  ;;  %s225_s15 = sshll.u32 %s1213_s4, 4  ;;  %s204_s12 = int_to_ptr.vmem [resolvable:$true] %s203_s12  ;;  %s226_s15 = int_to_ptr.vmem [resolvable:$true] %s225_s15 }
  0x16   : > { %s1224_s8 = scalar_select %p1020_p8, 1, 0 }
  0x17   : > { %p658_p10 = pneg %p1020_p8  ;;  %s745_s16 = scalar_lea.vmem %s215_s7, 64 }
  0x18   : > { %p746_p12 = scmp.ne.s32.totalorder %s215_s7, %s745_s16  ;;  %p753_p5 = scmp.lt.s32.totalorder %s215_s7, %s215_s7 }
  0x19   : > { %p1029_p11 = pnand %p658_p10, %p997_p1  ;;  %p754_p7 = scmp.lt.s32.totalorder %s745_s16, %s745_s16 }
  0x1b   : > { %p747_p13 = pneg %p1029_p11  ;;  %p755_p10 = por %p754_p7, %p753_p5 }
  0x1d   : > { %p748_p0 = pnand %p747_p13, %p746_p12 }
  0x1f   : > { %p749_p3 = pneg %p748_p0 }
  0x21   : > { %p756_p9 = pnand %p755_p10, %p749_p3 }
  0x23   : > { %759 = shalt.err (!%p756_p9)
}
  0x24   : > { %s923_s17 = smov [#allocation9]   ;;  %s924_s24 = smov [#allocation7]  }
  0x25   : > { %667 = dma.vmem_to_smem (!%p1029_p11), %s215_s7, 64, %s923_s17, [#allocation10]  }
  0x26   : > { %s1226_s1 = sld [smem:[#allocation18_spill]]  ;;  %s771_s6 = scalar_lea.vmem %s204_s12, 16 }
  0x27   : > { %p772_p12 = scmp.ne.s32.totalorder %s204_s12, %s771_s6  ;;  %p779_p3 = scmp.lt.s32.totalorder %s204_s12, %s204_s12 }
  0x28   : > { %p780_p9 = scmp.lt.s32.totalorder %s771_s6, %s771_s6 }
  0x29   : > { %p774_p0 = pnand %p772_p12, %p747_p13 }
  0x2a   : > { %p781_p7 = por %p780_p9, %p779_p3 }
  0x2b   : > { %p775_p5 = pneg %p774_p0 }
  0x2c   : > { %661 = dma.hbm_to_smem (!%p1029_p11), %s1226_s1, 64, %s924_s24, [#allocation5]  }
  0x2d   : > { %p782_p10 = pnand %p781_p7, %p775_p5 }
  0x2f   : > { %785 = shalt.err (!%p782_p10)
}
  0x30   : > { %s925_s10 = smov [#allocation8]   ;;  %s786_s7 = scalar_lea.vmem %s226_s15, 16 }
  0x31   : > { %664 = dma.vmem_to_smem (!%p1029_p11), %s204_s12, 16, %s925_s10, [#allocation6]  }
  0x32   : > { %p787_p6 = scmp.ne.s32.totalorder %s226_s15, %s786_s7  ;;  %p794_p8 = scmp.lt.s32.totalorder %s226_s15, %s226_s15 }
  0x33   : > { %p795_p12 = scmp.lt.s32.totalorder %s786_s7, %s786_s7 }
  0x34   : > { %p789_p1 = pnand %p787_p6, %p747_p13 }
  0x35   : > { %p796_p0 = por %p795_p12, %p794_p8 }
  0x36   : > { %p790_p4 = pneg %p789_p1 }
  0x38   : > { %p797_p2 = pnand %p796_p0, %p790_p4 }
  0x3a   : > { %800 = shalt.err (!%p797_p2)
}
  0x3b   : > { %s926_s11 = smov [#allocation11]   ;;  %s36_s12 = sadd.s32 1, %s917_s22 }
  0x3c   : > { %670 = dma.vmem_to_smem (!%p1029_p11), %s226_s15, 16, %s926_s11, [#allocation10]  }
  0x3d   : > { %s45_s13 = sadd.s32 1, %s909_s20  ;;  %p38_p1 = scmp.ge.s32.totalorder %s36_s12, 2 }
  0x3e   : > { %p52_p2 = scmp.ne.s32.totalorder %s909_s20, %s905_s19  ;;  %p53_p4 = scmp.eq.s32.totalorder %s921_s23, 0 }
  0x3f   : > { %p683_p6 = scmp.lt.s32.totalorder %s921_s23, 2  ;;  %s1241_s12 = smov (%p38_p1, %s36_s12), 0 }
  0x40   : > { %p54_p8 = por %p53_p4, %p52_p2  ;;  %p1227_p13 = scmp.ne.s32.totalorder %s1221_s27, 0 }
  0x41   : > { %s40_s14 = ssub.s32 %s917_s22, %s1241_s12  ;;  %s236_s16 = sand.u32 1, %s909_s20  }
  0x42   : > { %p1071_p5 = por %p1227_p13, %p52_p2  ;;  %p43_p3 = scmp.eq.s32.totalorder %s40_s14, 0 }
  0x43   : > { %s588_s15 = sshll.u32 %s236_s16, 3  ;;  %s636_s17 = sshll.u32 %s917_s22, 7 }
  0x44   : > { %s1080_s24 = scalar_select %p43_p3, %s909_s20, %s45_s13  }
  0x45   : > { %s247_s6 = scalar_lea.hbm %s1209_s0, %s636_s17  ;;  %s240_s10 = scalar_lea.vmem [#allocation2], %s588_s15 }
  0x46   : > { %s248_s7 = sshll.u32 %s240_s10, 4  ;;  %p1087_p11 = pnand %p683_p6, %p54_p8  ;;  %s249_s7 = int_to_ptr.vmem [resolvable:$true] %s248_s7 }
  0x47   : > { %s237_s11 = scalar_lea.sflag [#allocation3], %s236_s16  ;;  %s814_s14 = scalar_lea.vmem %s249_s7, 128 }
  0x48   : > { %p803_p9 = pneg %p1087_p11  ;;  %p815_p7 = scmp.ne.s32.totalorder %s249_s7, %s814_s14 }
  0x49   : > { %s927_s13 = smov [#allocation2]  }
  0x4a   : > { %p817_p10 = pnand %p815_p7, %p803_p9  ;;  %s819_s1 = sshll.u32 %s927_s13, 4  ;;  %s820_s1 = int_to_ptr.vmem [resolvable:$false] %s819_s1 }
  0x4b   : > { %s821_s17 = scalar_lea.vmem %s820_s1, 256  ;;  %p822_p0 = scmp.lt.s32.totalorder %s249_s7, %s820_s1 }
  0x4c   : > { %p818_p12 = pneg %p817_p10  ;;  %p823_p1 = scmp.lt.s32.totalorder %s821_s17, %s814_s14 }
  0x4e   : > { %p824_p2 = por %p823_p1, %p822_p0 }
  0x50   : > { %p825_p4 = pnand %p824_p2, %p818_p12 }
  0x52   : > { %828 = shalt.err (!%p825_p4)
}
  0x53   : > { %s928_s15 = smov 32   ;;  %s929_s25 = smov 2  }
  0x54   : > { %674 = dma.hbm_to_vmem [thread:$0]  (!%p1087_p11), %s247_s6, 128, %s249_s7, %s237_s11, %s928_s15, %s928_s15, %s929_s25  }
  0x55   : > { %p1230_p6 = scmp.ne.s32.totalorder %s1224_s8, 0 }
  0x56   : > { %s1098_s16 = sand.u32 (!%p1230_p6), 1, %s905_s19   ;;  %p1231_p8 = scmp.ne.s32.totalorder (!%p1230_p6), %s1222_s28, 0 }
  0x57   : > { %260 = sbr.rel (%p1230_p6) target bundleno = 159 (0x9f), region = 40  ;;  %s592_s1 = sshll.u32 (!%p1230_p6), %s1098_s16, 3 }
  0x58   : > { %s263_s30 = scalar_lea.sflag (!%p1230_p6), [#allocation3], %s1098_s16  ;;  %s266_s10 = scalar_lea.vmem (!%p1230_p6), [#allocation2], %s592_s1 }
  0x5c   : > { %880 = dma.done.wait (%p1231_p8), %s263_s30, 128  }
  0x5d   : > { %882 = vsyncadd (%p1231_p8), %s263_s30, 4294967168  ;;  %p1232_p13 = scmp.ne.s32.totalorder %s1220_s26, 0 }
  0x5f   : > { %884 = dma.done.wait (%p1232_p13), [#allocation5], 64  }
  0x60   : > { %886 = vsyncadd (%p1232_p13), [#allocation5], 4294967232 }
  0x61   : > { %888 = dma.done.wait (%p1232_p13), [#allocation6], 16  }
  0x62   : > { %890 = vsyncadd (%p1232_p13), [#allocation6], 4294967280 }
  0x63   : > { %892 = dma.done.wait (%p1232_p13), [#allocation10], 80  }
  0x64   : > { %894 = vsyncadd (%p1232_p13), [#allocation10], 4294967216 }
  0x65   : > { %287 = sfence }
  0x66   : > { %s317_s28 = sld [smem:[#allocation7]]  ;;  %v310_v0 = vld [vmem:[%s266_s10] sm:$0x3]  ;;  %v598_v1 = vld [vmem:[%s266_s10 + $0x2] sm:$0x3] }
  0x67   : > { %s601_s8 = sld [smem:[#allocation7 + $0x1]]  ;;  %v599_v2 = vld [vmem:[%s266_s10 + $0x4] sm:$0x3]  ;;  %v600_v4 = vld [vmem:[%s266_s10 + $0x6] sm:$0x3] }
  0x68   : > { %s602_s6 = sld [smem:[#allocation7 + $0x2]] }
  0x69   : > { %s603_s7 = sld [smem:[#allocation7 + $0x3]] }
  0x6a   : > { %s1120_s27 = sld [smem:[#allocation8]] }
  0x6b   : > { %s1122_s11 = sld [smem:[#allocation9]] }
  0x6c   : > { %v318_v3 = vstv %s317_s28  ;;  %s607_s14 = sld [smem:[#allocation7 + $0x80]] }
  0x6d   : > { %v319_v5 = vmul.f32 %v318_v3, %v310_v0  ;;  %v321_v6 = vstv %s601_s8  ;;  %s608_s13 = sld [smem:[#allocation7 + $0x81]] }
  0x6e   : > { %v322_v7 = vmul.f32 %v598_v1, %v321_v6  ;;  %v325_v8 = vstv %s602_s6  ;;  %s609_s26 = sld [smem:[#allocation7 + $0x82]] }
  0x6f   : > { %v326_v9 = vmul.f32 %v599_v2, %v325_v8  ;;  %v329_v10 = vstv %s603_s7  ;;  %s610_s17 = sld [smem:[#allocation7 + $0x83]] }
  0x70   : > { %v323_v11 = vadd.f32 %v322_v7, %v319_v5  ;;  %v330_v12 = vmul.f32 %v600_v4, %v329_v10  ;;  %s1124_s15 = sld [smem:[#allocation8 + $0x1]]  ;;  %v333_v18 = vstv %s1120_s27 }
  0x71   : > { %s1126_s25 = sld [smem:[#allocation9 + $0x80]]  ;;  %v337_v37 = vstv %s1122_s11 }
  0x72   : > { %v327_v13 = vadd.f32 %v326_v9, %v323_v11  ;;  %v349_v14 = vstv %s607_s14  ;;  %s616_s30 = sld [smem:[#allocation7 + $0x100]] }
  0x73   : > { %v350_v15 = vmul.f32 %v349_v14, %v310_v0  ;;  %v352_v16 = vstv %s608_s13  ;;  %s617_s10 = sld [smem:[#allocation7 + $0x101]] }
  0x74   : > { %v331_v17 = vadd.f32 %v330_v12, %v327_v13  ;;  %v353_v19 = vmul.f32 %v598_v1, %v352_v16  ;;  %v356_v20 = vstv %s609_s26  ;;  %s618_s28 = sld [smem:[#allocation7 + $0x102]] }
  0x75   : > { %v357_v21 = vmul.f32 %v599_v2, %v356_v20  ;;  %v360_v22 = vstv %s610_s17  ;;  %s619_s8 = sld [smem:[#allocation7 + $0x103]] }
  0x76   : > { %v354_v23 = vadd.f32 %v353_v19, %v350_v15  ;;  %v361_v24 = vmul.f32 %v600_v4, %v360_v22  ;;  %s1129_s6 = sld [smem:[#allocation8 + $0x2]]  ;;  %v334_v25 = vadd.f32 %v333_v18, %v331_v17  ;;  %v364_v28 = vstv %s1124_s15 }
  0x77   : > { %s1131_s7 = sld [smem:[#allocation9 + $0x100]]  ;;  %v368_v41 = vstv %s1126_s25 }
  0x78   : > { %v358_v26 = vadd.f32 %v357_v21, %v354_v23  ;;  %v384_v27 = vstv %s616_s30  ;;  %s1133_s14 = sld [smem:[#allocation11]]  ;;  %v335_v34 = vmax.f32 %v334_v25, 0.0 }
  0x79   : > { %v385_v29 = vmul.f32 %v384_v27, %v310_v0  ;;  %v387_v30 = vstv %s617_s10  ;;  %s604_s27 = sld [smem:[#allocation9 + $0x1]] }
  0x7a   : > { %v362_v31 = vadd.f32 %v361_v24, %v358_v26  ;;  %v388_v32 = vmul.f32 %v598_v1, %v387_v30  ;;  %v391_v33 = vstv %s618_s28  ;;  %s613_s13 = sld [smem:[#allocation9 + $0x81]]  ;;  %v338_v44 = vmul.f32 %v337_v37, %v335_v34 }
  0x7b   : > { %v392_v35 = vmul.f32 %v599_v2, %v391_v33  ;;  %v395_v36 = vstv %s619_s8  ;;  %s1136_s26 = sld [smem:[#allocation9 + $0x101]] }
  0x7c   : > { %v365_v38 = vadd.f32 %v364_v28, %v362_v31  ;;  %v389_v39 = vadd.f32 %v388_v32, %v385_v29  ;;  %v396_v40 = vmul.f32 %v600_v4, %v395_v36  ;;  %s1139_s17 = sld [smem:[#allocation11 + $0x1]]  ;;  %v399_v45 = vstv %s1129_s6 }
  0x7d   : > { %s605_s15 = sld [smem:[#allocation9 + $0x2]]  ;;  %v403_v54 = vstv %s1131_s7  ;;  %s309_s7 = scalar_lea.vmem [#allocation12], %s592_s1 }
  0x7e   : > { %v366_v42 = vmax.f32 %v365_v38, 0.0  ;;  %v393_v43 = vadd.f32 %v392_v35, %v389_v39  ;;  %s614_s30 = sld [smem:[#allocation9 + $0x82]]  ;;  %v419_v0 = vstv %s1133_s14  ;;  %s452_s14 = sshll.u32 %s309_s7, 4  ;;  %s1156_s14 = int_to_ptr.vmem [resolvable:$true] %s452_s14 }
  0x7f   : > { %v340_v46 = vstv %s604_s27  ;;  %s623_s10 = sld [smem:[#allocation9 + $0x102]]  ;;  %s637_s27 = sshll.u32 %s913_s21, 7 }
  0x80   : > { %v369_v47 = vmul.f32 %v368_v41, %v366_v42  ;;  %v397_v48 = vadd.f32 %v396_v40, %v393_v43  ;;  %v341_v49 = vmul.f32 %v340_v46, %v335_v34  ;;  %v372_v50 = vstv %s613_s13  ;;  %s1143_s11 = sld [smem:[#allocation11 + $0x2]]  ;;  %s438_s1 = scalar_lea.sflag [#allocation4], %s1098_s16 }
  0x81   : > { %v373_v51 = vmul.f32 %v372_v50, %v366_v42  ;;  %s606_s28 = sld [smem:[#allocation9 + $0x3]]  ;;  %v407_v55 = vstv %s1136_s26  ;;  %s930_s21 = smov [#allocation12]  }
  0x82   : > { %v400_v52 = vadd.f32 %v399_v45, %v397_v48  ;;  %s615_s25 = sld [smem:[#allocation9 + $0x83]]  ;;  %v370_v53 = vadd.f32 %v369_v47, %v338_v44  ;;  %v423_v3 = vstv %s1139_s17  ;;  %s1161_s17 = scalar_lea.hbm %s1214_s5, %s637_s27 }
  0x83   : > { %v343_v56 = vstv %s605_s15  ;;  %s624_s8 = sld [smem:[#allocation9 + $0x103]]  ;;  %v374_v58 = vadd.f32 %v373_v51, %v341_v49  ;;  %s829_s15 = scalar_lea.vmem %s1156_s14, 128 }
  0x84   : > { %v401_v57 = vmax.f32 %v400_v52, 0.0  ;;  %v344_v59 = vmul.f32 %v343_v56, %v335_v34  ;;  %v376_v60 = vstv %s614_s30  ;;  %s1147_s6 = sld [smem:[#allocation11 + $0x3]]  ;;  %p830_p3 = scmp.ne.s32.totalorder %s1156_s14, %s829_s15 }
  0x85   : > { %v377_v61 = vmul.f32 %v376_v60, %v366_v42  ;;  %v411_v62 = vstv %s623_s10  ;;  %s833_s30 = sshll.u32 %s930_s21, 4  ;;  %s834_s30 = int_to_ptr.vmem [resolvable:$false] %s833_s30 }
  0x86   : > { %v404_v63 = vmul.f32 %v403_v54, %v401_v57  ;;  %v408_v1 = vmul.f32 %v407_v55, %v401_v57  ;;  %v412_v2 = vmul.f32 %v411_v62, %v401_v57  ;;  %v428_v5 = vstv %s1143_s11  ;;  %p831_p11 = pnand %p830_p3, %p1071_p5  ;;  %s835_s10 = scalar_lea.vmem %s834_s30, 256 }
  0x87   : > { %v378_v4 = vadd.f32 %v377_v61, %v344_v59  ;;  %v346_v6 = vstv %s606_s28  ;;  %p836_p7 = scmp.lt.s32.totalorder %s1156_s14, %s834_s30  ;;  %p837_p10 = scmp.lt.s32.totalorder %s835_s10, %s829_s15 }
  0x88   : > { %v405_v7 = vadd.f32 %v404_v63, %v370_v53  ;;  %v409_v8 = vadd.f32 %v408_v1, %v374_v58  ;;  %v347_v9 = vmul.f32 %v346_v6, %v335_v34  ;;  %v380_v10 = vstv %s615_s25  ;;  %p832_p9 = pneg %p831_p11 }
  0x89   : > { %v413_v11 = vadd.f32 %v412_v2, %v378_v4  ;;  %v381_v12 = vmul.f32 %v380_v10, %v366_v42  ;;  %v415_v13 = vstv %s624_s8  ;;  %p838_p12 = por %p837_p10, %p836_p7 }
  0x8a   : > { %v420_v14 = vadd.f32 %v419_v0, %v405_v7  ;;  %v424_v15 = vadd.f32 %v423_v3, %v409_v8  ;;  %v416_v16 = vmul.f32 %v415_v13, %v401_v57  ;;  %v433_v19 = vstv %s1147_s6 }
  0x8b   : > { %v429_v17 = vadd.f32 %v428_v5, %v413_v11  ;;  %v382_v18 = vadd.f32 %v381_v12, %v347_v9  ;;  %p839_p0 = pnand %p838_p12, %p832_p9 }
  0x8c   : > { %421 = vst [vmem:[%s309_s7] sm:$0x3] %v420_v14  ;;  %626 = vst [vmem:[%s309_s7 + $0x2] sm:$0x3] %v424_v15 }
  0x8d   : > { %628 = vst [vmem:[%s309_s7 + $0x4] sm:$0x3] %v429_v17  ;;  %v417_v20 = vadd.f32 %v416_v16, %v382_v18 }
  0x8f   : > { %v434_v21 = vadd.f32 %v433_v19, %v417_v20 }
  0x91   : > { %630 = vst [vmem:[%s309_s7 + $0x6] sm:$0x3] %v434_v21 }
  0x92   : > { %842 = shalt.err (!%p839_p0)
}
  0x93   : > { %s843_s11 = scalar_lea.hbm %s1161_s17, 128  ;;  %s847_s8 = scalar_lea.hbm %s1214_s5, 256 }
  0x94   : > { %p844_p1 = scmp.ne.s32.totalorder %s1161_s17, %s843_s11  ;;  %p848_p6 = scmp.lt.s32.totalorder %s1161_s17, %s1214_s5 }
  0x95   : > { %p849_p8 = scmp.lt.s32.totalorder %s847_s8, %s843_s11 }
  0x96   : > { %p845_p2 = pnand %p844_p1, %p1071_p5 }
  0x97   : > { %p850_p13 = por %p849_p8, %p848_p6 }
  0x98   : > { %p846_p4 = pneg %p845_p2 }
  0x9a   : > { %p851_p3 = pnand %p850_p13, %p846_p4 }
  0x9c   : > { %854 = shalt.err (!%p851_p3)
}
  0x9d   : > { %s931_s27 = smov 32   ;;  %s932_s13 = smov 2  }
  0x9e   : > { %656 = dma.vmem_to_hbm [thread:$0]  (%p1071_p5), %s1156_s14, 128, %s1161_s17, %s438_s1, %s931_s27, %s931_s27, %s932_s13  }
  0x9f PF: > { %s467_s26 = sand.u32 1, %s901_s18   ;;  %p1233_p11 = scmp.ne.s32.totalorder %s1223_s29, 0 }
  0xa0   : > { %p1234_p9 = scmp.ge.s32.totalorder %s921_s23, 2  ;;  %s468_s15 = scalar_lea.sflag [#allocation4], %s467_s26 }
  0xa2   : > { %p676_p7 = pnand %p1234_p9, %p1233_p11 }
  0xa4   : > { %p677_p10 = pneg %p676_p7 }
  0xa6   : > { %896 = dma.done.wait (%p677_p10), %s468_s15, 128  }
  0xa7   : > { %898 = vsyncadd (%p677_p10), %s468_s15, 4294967168  ;;  %s24_s23 = sadd.s32 1, %s921_s23   ;;  %s1235_s18 = smov %s905_s19 }
  0xa8   : > { %p21_p12 = scmp.ge.s32.totalorder %s24_s23, 4   ;;  %s1236_s19 = smov %s909_s20 }
  0xa9   : > { %s1237_s20 = smov %s1080_s24  ;;  %s1238_s21 = smov %s917_s22 }
  0xaa   : > { %s1239_s22 = smov %s1241_s12  ;;  %23 = sbr.rel (!%p21_p12) target bundleno = 11 (0xb), region = 109 }
  0xaf   :  { %473 = vsyncpa [#allocation3], 1 }
  0xb0   :  { %475 = vsyncpa [#allocation3 + $0x1], 1 }
  0xb1   :  { %476 = vsyncpa [#allocation4], 1 }
  0xb2   :  { %478 = vsyncpa [#allocation4 + $0x1], 1 }
  0xb3   :  { %479 = vsyncpa [#allocation5], 1 }
  0xb4   :  { %481 = vsyncpa [#allocation5 + $0x1], 1 }
  0xb5   :  { %482 = vsyncpa [#allocation6], 1 }
  0xb6   :  { %484 = vsyncpa [#allocation6 + $0x1], 1 }
  0xb7   :  { %485 = vsyncpa [#allocation10], 1 }

</bundles_post_ra>
